<compile_context>
chip_gen: v7x
topology: tpu7x:2x2x1
jax: 0.10.0
libtpu: 0.0.40
codegen_flags: <defaults>
</compile_context>

<pallas_src>
import math

import jax
import jax.numpy as jnp
from jax import lax
from jax.experimental import pallas as pl
from jax.experimental.pallas import tpu as pltpu

_LN_EPS = 1e-5


def _pae_head_kernel(s_ref, w_ref, b_ref, out_ref):
    # s_ref:   (tm, C)        rows of the flattened input
    # w_ref:   (C, no_bins)   gamma-folded Linear weight (resident)
    # b_ref:   (1, no_bins)   beta-folded Linear bias    (resident)
    # out_ref: (tm, no_bins)
    x = s_ref[...].astype(jnp.float32)
    w = w_ref[...].astype(jnp.float32)
    b = b_ref[...].astype(jnp.float32)

    # LayerNorm statistics over the channel axis (biased variance, like
    # torch.nn.LayerNorm).  Affine (gamma/beta) is already folded into w/b.
    mean = jnp.mean(x, axis=-1, keepdims=True)          # XLU reduce
    xc = x - mean
    var = jnp.mean(xc * xc, axis=-1, keepdims=True)     # XLU reduce
    inv = lax.rsqrt(var + _LN_EPS)                      # EUP
    x_hat = xc * inv                                    # VPU

    # Single large-M 2-D MXU matmul with f32 accumulation.
    logits = jnp.dot(x_hat, w, preferred_element_type=jnp.float32) + b
    out_ref[...] = logits.astype(out_ref.dtype)


def pae_head_pallas(s, ln_weight, ln_bias, w, b, *, block_rows=2048):
    """pAEHead forward.

    s:         [*, C_s]            (any leading dims; channels last)
    ln_weight: [C_s]  ln_bias: [C_s]
    w:         [C_s, no_bins]      (i.e. Linear.weight.T)
    b:         [no_bins]
    returns    [*, no_bins]  float32
    """
    lead_shape = s.shape[:-1]
    C = s.shape[-1]
    no_bins = w.shape[1]
    assert w.shape[0] == C and ln_weight.shape == (C,) and ln_bias.shape == (C,)
    assert b.shape == (no_bins,)

    M = int(math.prod(lead_shape)) if lead_shape else 1
    s2 = s.reshape(M, C)

    # Fold the LayerNorm affine into the linear (parameter-sized work only;
    # in a real model this would be done once at load time).
    gamma = ln_weight.astype(jnp.float32)
    beta = ln_bias.astype(jnp.float32)
    w_f = gamma[:, None] * w.astype(jnp.float32)                       # (C, no_bins)
    b_f = (jnp.sum(beta[:, None] * w.astype(jnp.float32), axis=0)
           + b.astype(jnp.float32)).reshape(1, no_bins)                # (1, no_bins)

    # Row-tile selection:
    #  * keep double-buffered f32 input + output tiles under ~8 MiB so we stay
    #    well below the smallest scoped-VMEM default (16 MiB on v5e);
    #  * if everything fits in one tile, use a block equal to the full array
    #    (no partial blocks at all); otherwise use a multiple-of-8 tile and
    #    let Pallas mask the partial last block.
    bytes_per_row = (C + no_bins) * 4 * 2          # f32, double-buffered in+out
    vmem_budget = 8 * 1024 * 1024
    tm_cap = max(8, (vmem_budget // max(1, bytes_per_row)) // 8 * 8)
    tm_limit = min(int(block_rows), tm_cap)

    if M <= tm_limit:
        tm = M                                     # single full-array block
    else:
        tm = max(8, (tm_limit // 8) * 8)           # sublane-aligned row tile
    grid = (pl.cdiv(M, tm),)

    out = pl.pallas_call(
        _pae_head_kernel,
        out_shape=jax.ShapeDtypeStruct((M, no_bins), jnp.float32),
        grid_spec=pltpu.PrefetchScalarGridSpec(
            num_scalar_prefetch=0,
            grid=grid,
            in_specs=[
                pl.BlockSpec((tm, C), lambda i: (i, 0)),        # s rows (streamed)
                pl.BlockSpec((C, no_bins), lambda i: (0, 0)),   # W'    (resident)
                pl.BlockSpec((1, no_bins), lambda i: (0, 0)),   # b'    (resident)
            ],
            out_specs=pl.BlockSpec((tm, no_bins), lambda i: (i, 0)),
        ),
        compiler_params=pltpu.CompilerParams(
            dimension_semantics=("parallel",)),
    )(s2, w_f, b_f)

    return out.reshape(*lead_shape, no_bins)


def pae_head_forward(s, params, **kwargs):
    """Pallas equivalent of pAEHead.forward."""
    return pae_head_pallas(
        s,
        params["layer_norm"]["weight"],
        params["layer_norm"]["bias"],
        params["linear"]["w"],
        params["linear"]["b"],
        **kwargs,
    )


def _reference_forward(s, ln_w, ln_b, w, b):
    s = s.astype(jnp.float32)
    mean = jnp.mean(s, axis=-1, keepdims=True)
    var = jnp.mean((s - mean) ** 2, axis=-1, keepdims=True)
    s_hat = (s - mean) / jnp.sqrt(var + _LN_EPS) * ln_w + ln_b
    return jnp.einsum("...c,cd->...d", s_hat, w) + b


if __name__ == "__main__":
    # Small shapes consistent with the module: pair embedding [B, N, N, C_s].
    B, N, C_S, NO_BINS = 2, 16, 32, 64

    key = jax.random.PRNGKey(0)
    k_s, k_w, k_b, k_g, k_be, k_s2 = jax.random.split(key, 6)

    s = jax.random.normal(k_s, (B, N, N, C_S), dtype=jnp.float32)
    # Synthetic LayerNorm + Linear(c_s, no_bins) parameters.
    ln_weight = 1.0 + 0.05 * jax.random.normal(k_g, (C_S,), dtype=jnp.float32)
    ln_bias = 0.05 * jax.random.normal(k_be, (C_S,), dtype=jnp.float32)
    w = (jax.random.normal(k_w, (C_S, NO_BINS), dtype=jnp.float32)
         / jnp.sqrt(jnp.float32(C_S)))
    b = 0.01 * jax.random.normal(k_b, (NO_BINS,), dtype=jnp.float32)

    params = {
        "layer_norm": {"weight": ln_weight, "bias": ln_bias},
        "linear": {"w": w, "b": b},
    }

    # Check 1: multiple grid steps (M = 512, block_rows=256 -> grid of 2).
    logits = jax.block_until_ready(pae_head_forward(s, params, block_rows=256))
    ref = _reference_forward(s, ln_weight, ln_bias, w, b)
    assert logits.shape == (B, N, N, NO_BINS)
    assert logits.dtype == jnp.float32
    assert jnp.allclose(logits, ref, atol=2e-4, rtol=2e-4)

    # Check 2: non-divisible row count (M = 30) with the default big-tile path;
    # the block equals the full array, so no wrapper padding and no tail copy.
    s_small = jax.random.normal(k_s2, (3, 10, C_S), dtype=jnp.float32)
    logits_small = jax.block_until_ready(pae_head_forward(s_small, params))
    ref_small = _reference_forward(s_small, ln_weight, ln_bias, w, b)
    assert logits_small.shape == (3, 10, NO_BINS)
    assert jnp.allclose(logits_small, ref_small, atol=2e-4, rtol=2e-4)

    # Check 3: bf16 activations pass straight through (halves input HBM bytes);
    # LN stats + MXU accumulation stay f32 inside the kernel, output stays f32.
    s_bf16 = s.astype(jnp.bfloat16)
    logits_bf16 = jax.block_until_ready(
        pae_head_forward(s_bf16, params, block_rows=256))
    ref_bf16 = _reference_forward(s_bf16, ln_weight, ln_bias, w, b)
    assert logits_bf16.dtype == jnp.float32
    assert jnp.allclose(logits_bf16, ref_bf16, atol=1e-3, rtol=1e-3)

    print("KERNEL_OK")
</pallas_src>

<mosaic_0001>
module attributes {stable_mosaic.version = 11 : i64} {
  func.func @_pae_head_kernel(%arg0: i32, %arg1: memref<256x32xf32, #tpu.memory_space<vmem>>, %arg2: memref<32x64xf32, #tpu.memory_space<vmem>>, %arg3: memref<1x64xf32, #tpu.memory_space<vmem>>, %arg4: memref<256x64xf32, #tpu.memory_space<vmem>>) attributes {dimension_semantics = [#tpu.dimension_semantics<parallel>], iteration_bounds = array<i64: 2>, scalar_prefetch = 0 : i64, scratch_operands = 0 : i64, tpu.core_type = #tpu.core_type<tc>, window_params = [{transform_indices = @transform_0, window_bounds = array<i64: 256, 32>}, {pipeline_mode = #tpu.pipeline_mode<synchronous>, transform_indices = @transform_1, window_bounds = array<i64: 32, 64>}, {pipeline_mode = #tpu.pipeline_mode<synchronous>, transform_indices = @transform_2, window_bounds = array<i64: 1, 64>}, {transform_indices = @transform_3, window_bounds = array<i64: 256, 64>}]} {
    %c0 = arith.constant 0 : index
    %c0_0 = arith.constant 0 : index
    %0 = vector.load %arg1[%c0, %c0_0] : memref<256x32xf32, #tpu.memory_space<vmem>>, vector<256x32xf32>
    %c0_1 = arith.constant 0 : index
    %c0_2 = arith.constant 0 : index
    %1 = vector.load %arg2[%c0_1, %c0_2] : memref<32x64xf32, #tpu.memory_space<vmem>>, vector<32x64xf32>
    %c0_3 = arith.constant 0 : index
    %c0_4 = arith.constant 0 : index
    %2 = vector.load %arg3[%c0_3, %c0_4] : memref<1x64xf32, #tpu.memory_space<vmem>>, vector<1x64xf32>
    %cst = arith.constant dense<0.000000e+00> : vector<256xf32>
    %3 = vector.multi_reduction <add>, %0, %cst [1] : vector<256x32xf32> to vector<256xf32>
    %4 = vector.shape_cast %3 : vector<256xf32> to vector<256x1xf32>
    %cst_5 = arith.constant 3.200000e+01 : f32
    %5 = vector.broadcast %cst_5 : f32 to vector<256x1xf32>
    %6 = arith.divf %4, %5 : vector<256x1xf32>
    %7 = vector.broadcast %6 : vector<256x1xf32> to vector<256x32xf32>
    %8 = arith.subf %0, %7 : vector<256x32xf32>
    %9 = arith.mulf %8, %8 : vector<256x32xf32>
    %cst_6 = arith.constant dense<0.000000e+00> : vector<256xf32>
    %10 = vector.multi_reduction <add>, %9, %cst_6 [1] : vector<256x32xf32> to vector<256xf32>
    %11 = vector.shape_cast %10 : vector<256xf32> to vector<256x1xf32>
    %cst_7 = arith.constant 3.200000e+01 : f32
    %12 = vector.broadcast %cst_7 : f32 to vector<256x1xf32>
    %13 = arith.divf %11, %12 : vector<256x1xf32>
    %cst_8 = arith.constant 9.99999974E-6 : f32
    %14 = vector.broadcast %cst_8 : f32 to vector<256x1xf32>
    %15 = arith.addf %13, %14 : vector<256x1xf32>
    %16 = math.rsqrt %15 : vector<256x1xf32>
    %17 = vector.broadcast %16 : vector<256x1xf32> to vector<256x32xf32>
    %18 = arith.mulf %8, %17 : vector<256x32xf32>
    %cst_9 = arith.constant dense<0.000000e+00> : vector<256x64xf32>
    %19 = tpu.matmul %18, %1, %cst_9 {dimension_numbers = #tpu.dot_dimension_numbers<[1], [0], [0], [1], [0, 0, 1, 1], [], []>} : vector<256x32xf32>, vector<32x64xf32>, vector<256x64xf32> -> vector<256x64xf32>
    %20 = vector.broadcast %2 : vector<1x64xf32> to vector<256x64xf32>
    %21 = arith.addf %19, %20 : vector<256x64xf32>
    %c0_10 = arith.constant 0 : index
    %c0_11 = arith.constant 0 : index
    %22 = vector.load %arg4[%c0_10, %c0_11] : memref<256x64xf32, #tpu.memory_space<vmem>>, vector<256x64xf32>
    tpu.vector_store %arg4[%c0_10, %c0_11], %21 {strides = array<i32>} : memref<256x64xf32, #tpu.memory_space<vmem>>, vector<256x64xf32>,
    return
  }
  func.func @transform_0(%arg0: i32) -> (i32, i32) {
    %c0_i32 = arith.constant 0 : i32
    %c0_i32_0 = arith.constant 0 : i32
    return %arg0, %c0_i32 : i32, i32
  }
  func.func @transform_1(%arg0: i32) -> (i32, i32) {
    %c0_i32 = arith.constant 0 : i32
    %c0_i32_0 = arith.constant 0 : i32
    %c0_i32_1 = arith.constant 0 : i32
    return %c0_i32, %c0_i32_0 : i32, i32
  }
  func.func @transform_2(%arg0: i32) -> (i32, i32) {
    %c0_i32 = arith.constant 0 : i32
    %c0_i32_0 = arith.constant 0 : i32
    %c0_i32_1 = arith.constant 0 : i32
    return %c0_i32, %c0_i32_0 : i32, i32
  }
  func.func @transform_3(%arg0: i32) -> (i32, i32) {
    %c0_i32 = arith.constant 0 : i32
    %c0_i32_0 = arith.constant 0 : i32
    return %arg0, %c0_i32 : i32, i32
  }
}

</mosaic_0001>

<bundles_post_ra>
// kernel: tpu_custom_call.1
= control target key start
LH: loop header
LB: loop body
LE: loop exit
PB: predicated region body
PF: predicated region fallthrough
CT: control target
= control target key end

     0   :  { %s1293_s12 = smov 0   ;;  %s1850_s0 = inlined_call_operand.vmem [shape: f32[512,32], index: 0, kind: input, shape index: {}]   ;;  %s1851_s1 = inlined_call_operand.vmem [shape: f32[32,64], index: 1, kind: input, shape index: {}]   ;;  %s1852_s2 = inlined_call_operand.vmem [shape: f32[1,64], index: 2, kind: input, shape index: {}]   ;;  %s1853_s3 = inlined_call_operand.vmem [shape: f32[512,64], index: 3, kind: output, shape index: {}]  }
   0x1 LB: > { %s1045_s13 = sadd.s32 4294967295, %s1271_s12   ;;  %p1049_p0 = scmp.ge.s32.totalorder %s1271_s12, 1  ;;  %s1271_s12 = sphi %s1293_s12, %s13_s12  }
   0x2   : > { %p138_p1 = scmp.lt.s32.totalorder %s1271_s12, 3 }
   0x4   : > { %p139_p2 = pnand %p1049_p0, %p138_p1 }
   0x5   : > { %s1050_s14 = sshll.u32 (!%p139_p2), %s1045_s13, 5  ;;  %vm211_vm0 = vcmask (!%p139_p2), 261120   ;;  %vm956_vm1 = vcmask (!%p139_p2), 523264  }
   0x6   : > { %142 = sbr.rel (%p139_p2) target bundleno = 606 (0x25e), region = 32  ;;  %p163_p3 = scmp.lt.s32.totalorder (!%p139_p2), %s1050_s14, 63 }
   0xd   : > { %s1855_s14 = smov (!%p163_p3, %s1050_s14), 63 }
   0xe   : > { %s1051_s15 = sshll.u32 %s1855_s14, 3 }
   0xf   : > { %s1309_s18 = scalar_lea.vmem %s1850_s0, %s1051_s15  ;;  %s1749_s4 = scalar_lea.vmem %s1853_s3, %s1051_s15 }
  0x10   : > { %v1312_v0 = vld [vmem:[%s1309_s18] sm:$0xff]  ;;  %v1315_v1 = vld [vmem:[%s1309_s18 + $0x8] sm:$0xff]  ;;  %v1332_v8 = vld [vmem:[%s1309_s18 + $0x10] sm:$0xff] }
  0x11   : > { %v1318_v2 = vld [vmem:[%s1309_s18 + $0x80] sm:$0xff]  ;;  %v212_v3 = vsel %vm211_vm0, %v1312_v0, 0.0  ;;  %v215_v4 = vsel %vm211_vm0, %v1315_v1, 0.0  ;;  %v1325_v5 = vld [vmem:[%s1309_s18 + $0x88] sm:$0xff]  ;;  %v1335_v9 = vld [vmem:[%s1309_s18 + $0x90] sm:$0xff]  ;;  %v218_v10 = vsel %vm211_vm0, %v1332_v8, 0.0 }
  0x12   : > { %213 = vadd.xlane.f32.xlu0 %v212_v3  ;;  %216 = vadd.xlane.f32.xlu1 %v215_v4  ;;  %v260_v6 = vsel %vm211_vm0, %v1318_v2, 0.0  ;;  %v263_v7 = vsel %vm211_vm0, %v1325_v5, 0.0  ;;  %v266_v11 = vsel %vm211_vm0, %v1335_v9, 0.0  ;;  %v1342_v12 = vld [vmem:[%s1309_s18 + $0x18] sm:$0xff]  ;;  %v1352_v16 = vld [vmem:[%s1309_s18 + $0x20] sm:$0xff]  ;;  %v1362_v20 = vld [vmem:[%s1309_s18 + $0x28] sm:$0xff] }
  0x13   : > { %v1345_v13 = vld [vmem:[%s1309_s18 + $0x98] sm:$0xff]  ;;  %v221_v14 = vsel %vm211_vm0, %v1342_v12, 0.0  ;;  %v1355_v17 = vld [vmem:[%s1309_s18 + $0xa0] sm:$0xff]  ;;  %v224_v18 = vsel %vm211_vm0, %v1352_v16, 0.0  ;;  %v1365_v21 = vld [vmem:[%s1309_s18 + $0xa8] sm:$0xff]  ;;  %v227_v22 = vsel %vm211_vm0, %v1362_v20, 0.0 }
  0x14   : > { %v269_v15 = vsel %vm211_vm0, %v1345_v13, 0.0  ;;  %v272_v19 = vsel %vm211_vm0, %v1355_v17, 0.0  ;;  %v275_v23 = vsel %vm211_vm0, %v1365_v21, 0.0  ;;  %v1372_v24 = vld [vmem:[%s1309_s18 + $0x30] sm:$0xff]  ;;  %v1382_v28 = vld [vmem:[%s1309_s18 + $0x38] sm:$0xff]  ;;  %v1392_v32 = vld [vmem:[%s1309_s18 + $0x40] sm:$0xff] }
  0x15   : > { %v1375_v25 = vld [vmem:[%s1309_s18 + $0xb0] sm:$0xff]  ;;  %v230_v26 = vsel %vm211_vm0, %v1372_v24, 0.0  ;;  %v1385_v29 = vld [vmem:[%s1309_s18 + $0xb8] sm:$0xff]  ;;  %v233_v30 = vsel %vm211_vm0, %v1382_v28, 0.0  ;;  %v1395_v33 = vld [vmem:[%s1309_s18 + $0xc0] sm:$0xff]  ;;  %v236_v34 = vsel %vm211_vm0, %v1392_v32, 0.0 }
  0x16   : > { %261 = vadd.xlane.f32.xlu0 %v260_v6  ;;  %264 = vadd.xlane.f32.xlu1 %v263_v7  ;;  %v278_v27 = vsel %vm211_vm0, %v1375_v25, 0.0  ;;  %v281_v31 = vsel %vm211_vm0, %v1385_v29, 0.0  ;;  %v284_v35 = vsel %vm211_vm0, %v1395_v33, 0.0  ;;  %v1402_v36 = vld [vmem:[%s1309_s18 + $0x48] sm:$0xff]  ;;  %v1412_v40 = vld [vmem:[%s1309_s18 + $0x50] sm:$0xff]  ;;  %v1422_v44 = vld [vmem:[%s1309_s18 + $0x58] sm:$0xff] }
  0x17   : > { %v1405_v37 = vld [vmem:[%s1309_s18 + $0xc8] sm:$0xff]  ;;  %v239_v38 = vsel %vm211_vm0, %v1402_v36, 0.0  ;;  %v1415_v41 = vld [vmem:[%s1309_s18 + $0xd0] sm:$0xff]  ;;  %v242_v42 = vsel %vm211_vm0, %v1412_v40, 0.0  ;;  %v1425_v45 = vld [vmem:[%s1309_s18 + $0xd8] sm:$0xff]  ;;  %v245_v46 = vsel %vm211_vm0, %v1422_v44, 0.0 }
  0x18   : > { %v287_v39 = vsel %vm211_vm0, %v1405_v37, 0.0  ;;  %v290_v43 = vsel %vm211_vm0, %v1415_v41, 0.0  ;;  %v293_v47 = vsel %vm211_vm0, %v1425_v45, 0.0  ;;  %v1432_v48 = vld [vmem:[%s1309_s18 + $0x60] sm:$0xff]  ;;  %v1442_v52 = vld [vmem:[%s1309_s18 + $0x68] sm:$0xff]  ;;  %v1452_v56 = vld [vmem:[%s1309_s18 + $0x70] sm:$0xff] }
  0x19   : > { %v1435_v49 = vld [vmem:[%s1309_s18 + $0xe0] sm:$0xff]  ;;  %v248_v50 = vsel %vm211_vm0, %v1432_v48, 0.0  ;;  %v1445_v53 = vld [vmem:[%s1309_s18 + $0xe8] sm:$0xff]  ;;  %v251_v54 = vsel %vm211_vm0, %v1442_v52, 0.0  ;;  %v1455_v57 = vld [vmem:[%s1309_s18 + $0xf0] sm:$0xff]  ;;  %v254_v58 = vsel %vm211_vm0, %v1452_v56, 0.0 }
  0x1a   : > { %219 = vadd.xlane.f32.xlu0 %v218_v10  ;;  %267 = vadd.xlane.f32.xlu1 %v266_v11  ;;  %v296_v51 = vsel %vm211_vm0, %v1435_v49, 0.0  ;;  %v299_v55 = vsel %vm211_vm0, %v1445_v53, 0.0  ;;  %v302_v59 = vsel %vm211_vm0, %v1455_v57, 0.0  ;;  %v1462_v60 = vld [vmem:[%s1309_s18 + $0x78] sm:$0xff] }
  0x1b   : > { %v1465_v61 = vld [vmem:[%s1309_s18 + $0xf8] sm:$0xff]  ;;  %v257_v62 = vsel %vm211_vm0, %v1462_v60, 0.0 }
  0x1c   : > { %v305_v63 = vsel %vm211_vm0, %v1465_v61, 0.0 }
  0x1e   : > { %222 = vadd.xlane.f32.xlu0 %v221_v14  ;;  %270 = vadd.xlane.f32.xlu1 %v269_v15 }
  0x22   : > { %225 = vadd.xlane.f32.xlu0 %v224_v18  ;;  %273 = vadd.xlane.f32.xlu1 %v272_v19 }
  0x26   : > { %228 = vadd.xlane.f32.xlu0 %v227_v22  ;;  %276 = vadd.xlane.f32.xlu1 %v275_v23 }
  0x2a   : > { %231 = vadd.xlane.f32.xlu0 %v230_v26  ;;  %279 = vadd.xlane.f32.xlu1 %v278_v27 }
  0x2e   : > { %234 = vadd.xlane.f32.xlu0 %v233_v30  ;;  %282 = vadd.xlane.f32.xlu1 %v281_v31 }
  0x32   : > { %237 = vadd.xlane.f32.xlu0 %v236_v34  ;;  %285 = vadd.xlane.f32.xlu1 %v284_v35 }
  0x36   : > { %240 = vadd.xlane.f32.xlu0 %v239_v38  ;;  %288 = vadd.xlane.f32.xlu1 %v287_v39 }
  0x3a   : > { %243 = vadd.xlane.f32.xlu0 %v242_v42  ;;  %291 = vadd.xlane.f32.xlu1 %v290_v43 }
  0x3e   : > { %246 = vadd.xlane.f32.xlu0 %v245_v46  ;;  %294 = vadd.xlane.f32.xlu1 %v293_v47 }
  0x42   : > { %249 = vadd.xlane.f32.xlu0 %v248_v50  ;;  %297 = vadd.xlane.f32.xlu1 %v296_v51 }
  0x46   : > { %252 = vadd.xlane.f32.xlu0 %v251_v54  ;;  %300 = vadd.xlane.f32.xlu1 %v299_v55 }
  0x4a   : > { %255 = vadd.xlane.f32.xlu0 %v254_v58  ;;  %303 = vadd.xlane.f32.xlu1 %v302_v59 }
  0x4e   : > { %258 = vadd.xlane.f32.xlu0 %v257_v62  ;;  %306 = vadd.xlane.f32.xlu1 %v305_v63 }
  0x9f   : > { %v214_v3 = vpop.xlane.xlu0 %213  ;;  %v217_v4 = vpop.xlane.xlu1 %216 }
  0xa0   : > { %v309_v6 = vmul.f32 0.03125, %v214_v3  ;;  %v310_v7 = vmul.f32 0.03125, %v217_v4 }
  0xa2   : > { %v1472_v10 = vsub.f32 %v1312_v0, %v309_v6  ;;  %v1475_v11 = vsub.f32 %v1315_v1, %v310_v7 }
  0xa3   : > { %v262_v14 = vpop.xlane.xlu0 %261  ;;  %v265_v15 = vpop.xlane.xlu1 %264 }
  0xa4   : > { %v325_v18 = vmul.f32 0.03125, %v262_v14  ;;  %v326_v19 = vmul.f32 0.03125, %v265_v15  ;;  %v373_v22 = vmul.f32 %v1472_v10, %v1472_v10  ;;  %v374_v23 = vmul.f32 %v1475_v11, %v1475_v11 }
  0xa6   : > { %v1482_v26 = vsub.f32 %v1318_v2, %v325_v18  ;;  %v1485_v27 = vsub.f32 %v1325_v5, %v326_v19  ;;  %v405_v0 = vsel %vm211_vm0, %v373_v22, 0.0  ;;  %v408_v31 = vsel %vm211_vm0, %v374_v23, 0.0 }
  0xa7   : > { %406 = vadd.xlane.f32.xlu0 %v405_v0  ;;  %v220_v1 = vpop.xlane.xlu0 %219  ;;  %v268_v30 = vpop.xlane.xlu1 %267 }
  0xa8   : > { %v311_v34 = vmul.f32 0.03125, %v220_v1  ;;  %v327_v35 = vmul.f32 0.03125, %v268_v30  ;;  %v389_v38 = vmul.f32 %v1482_v26, %v1482_v26  ;;  %v390_v39 = vmul.f32 %v1485_v27, %v1485_v27 }
  0xaa   : > { %v1494_v2 = vsub.f32 %v1332_v8, %v311_v34  ;;  %v1497_v5 = vsub.f32 %v1335_v9, %v327_v35  ;;  %v453_v42 = vsel %vm211_vm0, %v389_v38, 0.0  ;;  %v456_v47 = vsel %vm211_vm0, %v390_v39, 0.0 }
  0xab   : > { %409 = vadd.xlane.f32.xlu0 %v408_v31  ;;  %454 = vadd.xlane.f32.xlu1 %v453_v42  ;;  %v223_v43 = vpop.xlane.xlu0 %222  ;;  %v271_v46 = vpop.xlane.xlu1 %270 }
  0xac   : > { %v312_v50 = vmul.f32 0.03125, %v223_v43  ;;  %v328_v51 = vmul.f32 0.03125, %v271_v46  ;;  %v375_v54 = vmul.f32 %v1494_v2, %v1494_v2  ;;  %v391_v8 = vmul.f32 %v1497_v5, %v1497_v5 }
  0xae   : > { %v1506_v55 = vsub.f32 %v1342_v12, %v312_v50  ;;  %v1509_v9 = vsub.f32 %v1345_v13, %v328_v51  ;;  %v411_v58 = vsel %vm211_vm0, %v375_v54, 0.0  ;;  %v459_v63 = vsel %vm211_vm0, %v391_v8, 0.0 }
  0xaf   : > { %457 = vadd.xlane.f32.xlu1 %v456_v47  ;;  %412 = vadd.xlane.f32.xlu0 %v411_v58  ;;  %v226_v59 = vpop.xlane.xlu0 %225  ;;  %v274_v62 = vpop.xlane.xlu1 %273 }
  0xb0   : > { %v313_v3 = vmul.f32 0.03125, %v226_v59  ;;  %v329_v4 = vmul.f32 0.03125, %v274_v62  ;;  %v376_v6 = vmul.f32 %v1506_v55, %v1506_v55  ;;  %v392_v12 = vmul.f32 %v1509_v9, %v1509_v9 }
  0xb2   : > { %v1518_v7 = vsub.f32 %v1352_v16, %v313_v3  ;;  %v1521_v13 = vsub.f32 %v1355_v17, %v329_v4  ;;  %v414_v14 = vsel %vm211_vm0, %v376_v6, 0.0  ;;  %v462_v19 = vsel %vm211_vm0, %v392_v12, 0.0 }
  0xb3   : > { %460 = vadd.xlane.f32.xlu1 %v459_v63  ;;  %415 = vadd.xlane.f32.xlu0 %v414_v14  ;;  %v229_v15 = vpop.xlane.xlu0 %228  ;;  %v277_v18 = vpop.xlane.xlu1 %276 }
  0xb4   : > { %v314_v22 = vmul.f32 0.03125, %v229_v15  ;;  %v330_v23 = vmul.f32 0.03125, %v277_v18  ;;  %v377_v0 = vmul.f32 %v1518_v7, %v1518_v7  ;;  %v393_v16 = vmul.f32 %v1521_v13, %v1521_v13  ;;  %v207_v15 = vld [vmem:[%s1851_s1 + $0x8] sm:$0xff] }
  0xb6   : > { %v1530_v1 = vsub.f32 %v1362_v20, %v314_v22  ;;  %v1533_v17 = vsub.f32 %v1365_v21, %v330_v23  ;;  %v417_v30 = vsel %vm211_vm0, %v377_v0, 0.0  ;;  %v465_v35 = vsel %vm211_vm0, %v393_v16, 0.0 }
  0xb7   : > { %463 = vadd.xlane.f32.xlu1 %v462_v19  ;;  %418 = vadd.xlane.f32.xlu0 %v417_v30  ;;  %v232_v31 = vpop.xlane.xlu0 %231  ;;  %v280_v34 = vpop.xlane.xlu1 %279 }
  0xb8   : > { %v315_v38 = vmul.f32 0.03125, %v232_v31  ;;  %v331_v39 = vmul.f32 0.03125, %v280_v34  ;;  %v378_v42 = vmul.f32 %v1530_v1, %v1530_v1  ;;  %v394_v20 = vmul.f32 %v1533_v17, %v1533_v17 }
  0xba   : > { %v1542_v43 = vsub.f32 %v1372_v24, %v315_v38  ;;  %v1545_v21 = vsub.f32 %v1375_v25, %v331_v39  ;;  %v420_v46 = vsel %vm211_vm0, %v378_v42, 0.0  ;;  %v468_v51 = vsel %vm211_vm0, %v394_v20, 0.0  ;;  %v209_v38 = vld [vmem:[%s1851_s1 + $0x18] sm:$0xff] }
  0xbb   : > { %466 = vadd.xlane.f32.xlu1 %v465_v35  ;;  %421 = vadd.xlane.f32.xlu0 %v420_v46  ;;  %v235_v47 = vpop.xlane.xlu0 %234  ;;  %v283_v50 = vpop.xlane.xlu1 %282 }
  0xbc   : > { %v316_v54 = vmul.f32 0.03125, %v235_v47  ;;  %v332_v8 = vmul.f32 0.03125, %v283_v50  ;;  %v379_v58 = vmul.f32 %v1542_v43, %v1542_v43  ;;  %v395_v24 = vmul.f32 %v1545_v21, %v1545_v21 }
  0xbe   : > { %v1554_v59 = vsub.f32 %v1382_v28, %v316_v54  ;;  %v1557_v25 = vsub.f32 %v1385_v29, %v332_v8  ;;  %v423_v62 = vsel %vm211_vm0, %v379_v58, 0.0  ;;  %v471_v4 = vsel %vm211_vm0, %v395_v24, 0.0  ;;  %v206_v29 = vld [vmem:[%s1851_s1] sm:$0xff] }
  0xbf   : > { %469 = vadd.xlane.f32.xlu1 %v468_v51  ;;  %424 = vadd.xlane.f32.xlu0 %v423_v62  ;;  %v238_v63 = vpop.xlane.xlu0 %237  ;;  %v286_v3 = vpop.xlane.xlu1 %285  ;;  %v1181_v18 = vpack.c.bf16 %v207_v15, %v206_v29 }
  0xc0   : > { %v317_v6 = vmul.f32 0.03125, %v238_v63  ;;  %v333_v12 = vmul.f32 0.03125, %v286_v3  ;;  %v380_v14 = vmul.f32 %v1554_v59, %v1554_v59  ;;  %v396_v28 = vmul.f32 %v1557_v25, %v1557_v25 }
  0xc1   : > { %1182 = vmatprep.subr.bf16.mxu0 %v1181_v18  ;;  %1189 = vmatprep.subr.bf16.mxu1 %v1181_v18 }
  0xc2   : > { %v1572_v19 = vsub.f32 %v1392_v32, %v317_v6  ;;  %v1575_v22 = vsub.f32 %v1395_v33, %v333_v12  ;;  %v426_v23 = vsel %vm211_vm0, %v380_v14, 0.0  ;;  %v474_v30 = vsel %vm211_vm0, %v396_v28, 0.0  ;;  %v208_v33 = vld [vmem:[%s1851_s1 + $0x10] sm:$0xff]  ;;  %1184 = vmatpush3.bf16.msra.mxu0 %v1181_v18  ;;  %1191 = vmatpush3.bf16.msra.mxu1 %v1181_v18 }
  0xc3   : > { %472 = vadd.xlane.f32.xlu1 %v471_v4  ;;  %427 = vadd.xlane.f32.xlu0 %v426_v23  ;;  %v241_v0 = vpop.xlane.xlu0 %240  ;;  %v289_v16 = vpop.xlane.xlu1 %288  ;;  %v1185_v39 = vpack.c.bf16 %v209_v38, %v208_v33 }
  0xc4   : > { %v318_v31 = vmul.f32 0.03125, %v241_v0  ;;  %v334_v34 = vmul.f32 0.03125, %v289_v16  ;;  %v381_v35 = vmul.f32 %v1572_v19, %v1572_v19  ;;  %v397_v32 = vmul.f32 %v1575_v22, %v1575_v22 }
  0xc5   : > { %1186 = vmatprep.subr.bf16.mxu0 %v1185_v39  ;;  %1190 = vmatprep.subr.bf16.mxu1 %v1185_v39 }
  0xc6   : > { %v1590_v42 = vsub.f32 %v1402_v36, %v318_v31  ;;  %v1593_v20 = vsub.f32 %v1405_v37, %v334_v34  ;;  %v429_v46 = vsel %vm211_vm0, %v381_v35, 0.0  ;;  %v477_v51 = vsel %vm211_vm0, %v397_v32, 0.0  ;;  %1188 = vmatpush3.bf16.msra.mxu0 %v1185_v39  ;;  %1192 = vmatpush3.bf16.msra.mxu1 %v1185_v39 }
  0xc7   : > { %475 = vadd.xlane.f32.xlu1 %v474_v30  ;;  %430 = vadd.xlane.f32.xlu0 %v429_v46  ;;  %v244_v47 = vpop.xlane.xlu0 %243  ;;  %v292_v50 = vpop.xlane.xlu1 %291 }
  0xc8   : > { %v319_v54 = vmul.f32 0.03125, %v244_v47  ;;  %v335_v8 = vmul.f32 0.03125, %v292_v50  ;;  %v382_v58 = vmul.f32 %v1590_v42, %v1590_v42  ;;  %v398_v36 = vmul.f32 %v1593_v20, %v1593_v20 }
  0xca   : > { %v1602_v37 = vsub.f32 %v1412_v40, %v319_v54  ;;  %v1605_v24 = vsub.f32 %v1415_v41, %v335_v8  ;;  %v432_v62 = vsel %vm211_vm0, %v382_v58, 0.0  ;;  %v480_v4 = vsel %vm211_vm0, %v398_v36, 0.0 }
  0xcb   : > { %478 = vadd.xlane.f32.xlu1 %v477_v51  ;;  %433 = vadd.xlane.f32.xlu0 %v432_v62  ;;  %v247_v63 = vpop.xlane.xlu0 %246  ;;  %v295_v3 = vpop.xlane.xlu1 %294 }
  0xcc   : > { %v320_v6 = vmul.f32 0.03125, %v247_v63  ;;  %v336_v12 = vmul.f32 0.03125, %v295_v3  ;;  %v383_v14 = vmul.f32 %v1602_v37, %v1602_v37  ;;  %v399_v40 = vmul.f32 %v1605_v24, %v1605_v24 }
  0xce   : > { %v1614_v28 = vsub.f32 %v1422_v44, %v320_v6  ;;  %v1617_v41 = vsub.f32 %v1425_v45, %v336_v12  ;;  %v435_v29 = vsel %vm211_vm0, %v383_v14, 0.0  ;;  %v483_v23 = vsel %vm211_vm0, %v399_v40, 0.0 }
  0xcf   : > { %481 = vadd.xlane.f32.xlu1 %v480_v4  ;;  %436 = vadd.xlane.f32.xlu0 %v435_v29  ;;  %v250_v15 = vpop.xlane.xlu0 %249  ;;  %v298_v18 = vpop.xlane.xlu1 %297 }
  0xd0   : > { %v321_v0 = vmul.f32 0.03125, %v250_v15  ;;  %v337_v16 = vmul.f32 0.03125, %v298_v18  ;;  %v384_v30 = vmul.f32 %v1614_v28, %v1614_v28  ;;  %v400_v44 = vmul.f32 %v1617_v41, %v1617_v41 }
  0xd2   : > { %v1626_v31 = vsub.f32 %v1432_v48, %v321_v0  ;;  %v1629_v45 = vsub.f32 %v1435_v49, %v337_v16  ;;  %v438_v34 = vsel %vm211_vm0, %v384_v30, 0.0  ;;  %v486_v33 = vsel %vm211_vm0, %v400_v44, 0.0 }
  0xd3   : > { %484 = vadd.xlane.f32.xlu1 %v483_v23  ;;  %439 = vadd.xlane.f32.xlu0 %v438_v34  ;;  %v253_v35 = vpop.xlane.xlu0 %252  ;;  %v301_v32 = vpop.xlane.xlu1 %300 }
  0xd4   : > { %v322_v38 = vmul.f32 0.03125, %v253_v35  ;;  %v338_v39 = vmul.f32 0.03125, %v301_v32  ;;  %v385_v46 = vmul.f32 %v1626_v31, %v1626_v31  ;;  %v401_v48 = vmul.f32 %v1629_v45, %v1629_v45 }
  0xd6   : > { %v1638_v47 = vsub.f32 %v1442_v52, %v322_v38  ;;  %v1641_v49 = vsub.f32 %v1445_v53, %v338_v39  ;;  %v441_v50 = vsel %vm211_vm0, %v385_v46, 0.0  ;;  %v489_v8 = vsel %vm211_vm0, %v401_v48, 0.0 }
  0xd7   : > { %487 = vadd.xlane.f32.xlu1 %v486_v33  ;;  %442 = vadd.xlane.f32.xlu0 %v441_v50  ;;  %v256_v51 = vpop.xlane.xlu0 %255  ;;  %v304_v54 = vpop.xlane.xlu1 %303 }
  0xd8   : > { %v323_v58 = vmul.f32 0.03125, %v256_v51  ;;  %v339_v36 = vmul.f32 0.03125, %v304_v54  ;;  %v386_v62 = vmul.f32 %v1638_v47, %v1638_v47  ;;  %v402_v52 = vmul.f32 %v1641_v49, %v1641_v49 }
  0xda   : > { %v1650_v63 = vsub.f32 %v1452_v56, %v323_v58  ;;  %v1653_v53 = vsub.f32 %v1455_v57, %v339_v36  ;;  %v444_v3 = vsel %vm211_vm0, %v386_v62, 0.0  ;;  %v492_v12 = vsel %vm211_vm0, %v402_v52, 0.0 }
  0xdb   : > { %490 = vadd.xlane.f32.xlu1 %v489_v8  ;;  %445 = vadd.xlane.f32.xlu0 %v444_v3  ;;  %v259_v4 = vpop.xlane.xlu0 %258  ;;  %v307_v6 = vpop.xlane.xlu1 %306 }
  0xdc   : > { %v324_v14 = vmul.f32 0.03125, %v259_v4  ;;  %v340_v40 = vmul.f32 0.03125, %v307_v6  ;;  %v387_v29 = vmul.f32 %v1650_v63, %v1650_v63  ;;  %v403_v56 = vmul.f32 %v1653_v53, %v1653_v53 }
  0xde   : > { %v1662_v15 = vsub.f32 %v1462_v60, %v324_v14  ;;  %v1665_v57 = vsub.f32 %v1465_v61, %v340_v40  ;;  %v447_v18 = vsel %vm211_vm0, %v387_v29, 0.0  ;;  %v495_v23 = vsel %vm211_vm0, %v403_v56, 0.0 }
  0xdf   : > { %493 = vadd.xlane.f32.xlu1 %v492_v12  ;;  %448 = vadd.xlane.f32.xlu0 %v447_v18 }
  0xe0   : > { %v388_v0 = vmul.f32 %v1662_v15, %v1662_v15  ;;  %v404_v16 = vmul.f32 %v1665_v57, %v1665_v57 }
  0xe2   : > { %v450_v30 = vsel %vm211_vm0, %v388_v0, 0.0  ;;  %v498_v60 = vsel %vm211_vm0, %v404_v16, 0.0 }
  0xe3   : > { %496 = vadd.xlane.f32.xlu1 %v495_v23  ;;  %451 = vadd.xlane.f32.xlu0 %v450_v30 }
  0xe7   : > { %499 = vadd.xlane.f32.xlu1 %v498_v60 }
 0x134   : > { %v407_v61 = vpop.xlane.xlu0 %406 }
 0x135   : > { %v501_v44 = vmul.f32 0.03125, %v407_v61 }
 0x137   : > { %v533_v34 = vadd.f32 1e-05, %v501_v44 }
 0x138   : > { %v455_v35 = vpop.xlane.xlu1 %454  ;;  %v410_v32 = vpop.xlane.xlu0 %409 }
 0x139   : > { %1201 = vrsqrt.f32 %v533_v34  ;;  %v517_v33 = vmul.f32 0.03125, %v455_v35  ;;  %v502_v38 = vmul.f32 0.03125, %v410_v32 }
 0x13b   : > { %v549_v39 = vadd.f32 1e-05, %v517_v33  ;;  %v534_v46 = vadd.f32 1e-05, %v502_v38 }
 0x13c   : > { %v458_v48 = vpop.xlane.xlu1 %457  ;;  %v413_v50 = vpop.xlane.xlu0 %412 }
 0x13d   : > { %1203 = vrsqrt.f32 %v549_v39  ;;  %v518_v51 = vmul.f32 0.03125, %v458_v48  ;;  %v503_v54 = vmul.f32 0.03125, %v413_v50 }
 0x13e   : > { %1205 = vrsqrt.f32 %v534_v46 }
 0x13f   : > { %v550_v8 = vadd.f32 1e-05, %v518_v51  ;;  %v535_v58 = vadd.f32 1e-05, %v503_v54 }
 0x140   : > { %v461_v36 = vpop.xlane.xlu1 %460  ;;  %v416_v62 = vpop.xlane.xlu0 %415 }
 0x141   : > { %1207 = vrsqrt.f32 %v550_v8  ;;  %v519_v52 = vmul.f32 0.03125, %v461_v36  ;;  %v504_v3 = vmul.f32 0.03125, %v416_v62 }
 0x142   : > { %1209 = vrsqrt.f32 %v535_v58 }
 0x143   : > { %v1202_v4 = vpop.eup %1201  ;;  %v551_v6 = vadd.f32 1e-05, %v519_v52  ;;  %v536_v12 = vadd.f32 1e-05, %v504_v3 }
 0x144   : > { %v464_v14 = vpop.xlane.xlu1 %463  ;;  %v419_v40 = vpop.xlane.xlu0 %418  ;;  %v597_v29 = vmul.f32 %v1202_v4, %v1472_v10 }
 0x145   : > { %1211 = vrsqrt.f32 %v551_v6  ;;  %v520_v56 = vmul.f32 0.03125, %v464_v14  ;;  %v505_v18 = vmul.f32 0.03125, %v419_v40 }
 0x146   : > { %1213 = vrsqrt.f32 %v536_v12  ;;  %1133 = vmatprep.mubr.msk.f32.mxu0 %vm211_vm0, %v597_v29 }
 0x147   : > { %v1204_v23 = vpop.eup %1203  ;;  %v552_v0 = vadd.f32 1e-05, %v520_v56  ;;  %v537_v16 = vadd.f32 1e-05, %v505_v18 }
 0x148   : > { %v1206_v30 = vpop.eup %1205  ;;  %v467_v60 = vpop.xlane.xlu1 %466  ;;  %v613_v44 = vmul.f32 %v1204_v23, %v1482_v26 }
 0x149   : > { %v422_v61 = vpop.xlane.xlu0 %421  ;;  %1215 = vrsqrt.f32 %v552_v0  ;;  %v521_v34 = vmul.f32 0.03125, %v467_v60  ;;  %v598_v32 = vmul.f32 %v1206_v30, %v1475_v11 }
 0x14a   : > { %v506_v35 = vmul.f32 0.03125, %v422_v61  ;;  %1217 = vrsqrt.f32 %v537_v16  ;;  %1157 = vmatprep.mubr.msk.f32.mxu1 %vm211_vm0, %v613_v44 }
 0x14b   : > { %v1208_v10 = vpop.eup %1207  ;;  %v553_v33 = vadd.f32 1e-05, %v521_v34  ;;  %1134 = vmatmul.mubr.msk.f32.vlgmr.msra.gmra.mrb[0].mxu0 %vm211_vm0, %v598_v32 }
 0x14c   : > { %v538_v38 = vadd.f32 1e-05, %v506_v35  ;;  %v1210_v39 = vpop.eup %1209  ;;  %v470_v46 = vpop.xlane.xlu1 %469  ;;  %v614_v50 = vmul.f32 %v1208_v10, %v1485_v27 }
 0x14d   : > { %v425_v48 = vpop.xlane.xlu0 %424  ;;  %1219 = vrsqrt.f32 %v553_v33  ;;  %v522_v26 = vmul.f32 0.03125, %v470_v46  ;;  %v599_v54 = vmul.f32 %v1210_v39, %v1494_v2 }
 0x14e   : > { %v507_v51 = vmul.f32 0.03125, %v425_v48  ;;  %1221 = vrsqrt.f32 %v538_v38  ;;  %1158 = vmatmul.mubr.msk.f32.vlgmr.msra.gmra.mrb[0].mxu1 %vm211_vm0, %v614_v50 }
 0x14f   : > { %v1212_v11 = vpop.eup %1211  ;;  %v554_v8 = vadd.f32 1e-05, %v522_v26  ;;  %1136 = vmatprep.mubr.msk.f32.mxu0 %vm211_vm0, %v599_v54 }
 0x150   : > { %v539_v58 = vadd.f32 1e-05, %v507_v51  ;;  %v1214_v36 = vpop.eup %1213  ;;  %v473_v62 = vpop.xlane.xlu1 %472  ;;  %v615_v3 = vmul.f32 %v1212_v11, %v1497_v5 }
 0x151   : > { %v428_v52 = vpop.xlane.xlu0 %427  ;;  %1223 = vrsqrt.f32 %v554_v8  ;;  %v523_v27 = vmul.f32 0.03125, %v473_v62  ;;  %v600_v6 = vmul.f32 %v1214_v36, %v1506_v55 }
 0x152   : > { %v508_v4 = vmul.f32 0.03125, %v428_v52  ;;  %1225 = vrsqrt.f32 %v539_v58  ;;  %1160 = vmatprep.mubr.msk.f32.mxu1 %vm211_vm0, %v615_v3 }
 0x153   : > { %v1216_v2 = vpop.eup %1215  ;;  %v555_v12 = vadd.f32 1e-05, %v523_v27  ;;  %1137 = vmatmul.mubr.msk.f32.gmra.mrb[2].mxu0 %vm211_vm0, %v600_v6 }
 0x154   : > { %v540_v14 = vadd.f32 1e-05, %v508_v4  ;;  %v1218_v40 = vpop.eup %1217  ;;  %v476_v29 = vpop.xlane.xlu1 %475  ;;  %v616_v18 = vmul.f32 %v1216_v2, %v1509_v9 }
 0x155   : > { %v431_v56 = vpop.xlane.xlu0 %430  ;;  %1227 = vrsqrt.f32 %v555_v12  ;;  %v524_v5 = vmul.f32 0.03125, %v476_v29  ;;  %v601_v0 = vmul.f32 %v1218_v40, %v1518_v7 }
 0x156   : > { %v509_v23 = vmul.f32 0.03125, %v431_v56  ;;  %1229 = vrsqrt.f32 %v540_v14  ;;  %1161 = vmatmul.mubr.msk.f32.gmra.mrb[2].mxu1 %vm211_vm0, %v616_v18 }
 0x157   : > { %v1220_v55 = vpop.eup %1219  ;;  %v556_v16 = vadd.f32 1e-05, %v524_v5  ;;  %1139 = vmatprep.mubr.msk.f32.mxu0 %vm211_vm0, %v601_v0 }
 0x158   : > { %v541_v30 = vadd.f32 1e-05, %v509_v23  ;;  %v1222_v60 = vpop.eup %1221  ;;  %v479_v61 = vpop.xlane.xlu1 %478  ;;  %v617_v34 = vmul.f32 %v1220_v55, %v1521_v13 }
 0x159   : > { %v434_v44 = vpop.xlane.xlu0 %433  ;;  %1231 = vrsqrt.f32 %v556_v16  ;;  %v525_v9 = vmul.f32 0.03125, %v479_v61  ;;  %v602_v32 = vmul.f32 %v1222_v60, %v1530_v1 }
 0x15a   : > { %v510_v35 = vmul.f32 0.03125, %v434_v44  ;;  %1233 = vrsqrt.f32 %v541_v30  ;;  %1163 = vmatprep.mubr.msk.f32.mxu1 %vm211_vm0, %v617_v34 }
 0x15b   : > { %v1224_v7 = vpop.eup %1223  ;;  %v557_v10 = vadd.f32 1e-05, %v525_v9  ;;  %1140 = vmatmul.mubr.msk.f32.gmra.mrb[4].mxu0 %vm211_vm0, %v602_v32 }
 0x15c   : > { %v542_v33 = vadd.f32 1e-05, %v510_v35  ;;  %v1226_v38 = vpop.eup %1225  ;;  %v482_v39 = vpop.xlane.xlu1 %481  ;;  %v618_v48 = vmul.f32 %v1224_v7, %v1533_v17 }
 0x15d   : > { %v437_v46 = vpop.xlane.xlu0 %436  ;;  %1235 = vrsqrt.f32 %v557_v10  ;;  %v526_v13 = vmul.f32 0.03125, %v482_v39  ;;  %v603_v26 = vmul.f32 %v1226_v38, %v1542_v43 }
 0x15e   : > { %v511_v50 = vmul.f32 0.03125, %v437_v46  ;;  %1237 = vrsqrt.f32 %v542_v33  ;;  %1164 = vmatmul.mubr.msk.f32.gmra.mrb[4].mxu1 %vm211_vm0, %v618_v48 }
 0x15f   : > { %v1228_v1 = vpop.eup %1227  ;;  %v558_v51 = vadd.f32 1e-05, %v526_v13  ;;  %1142 = vmatprep.mubr.msk.f32.mxu0 %vm211_vm0, %v603_v26 }
 0x160   : > { %v543_v54 = vadd.f32 1e-05, %v511_v50  ;;  %v1230_v11 = vpop.eup %1229  ;;  %v485_v8 = vpop.xlane.xlu1 %484  ;;  %v619_v36 = vmul.f32 %v1228_v1, %v1545_v21 }
 0x161   : > { %v440_v58 = vpop.xlane.xlu0 %439  ;;  %1239 = vrsqrt.f32 %v558_v51  ;;  %v527_v17 = vmul.f32 0.03125, %v485_v8  ;;  %v604_v52 = vmul.f32 %v1230_v11, %v1554_v59 }
 0x162   : > { %v512_v62 = vmul.f32 0.03125, %v440_v58  ;;  %1241 = vrsqrt.f32 %v543_v54  ;;  %1166 = vmatprep.mubr.msk.f32.mxu1 %vm211_vm0, %v619_v36 }
 0x163   : > { %v1232_v43 = vpop.eup %1231  ;;  %v559_v3 = vadd.f32 1e-05, %v527_v17  ;;  %1143 = vmatmul.mubr.msk.f32.gmra.mrb[6].mxu0 %vm211_vm0, %v604_v52 }
 0x164   : > { %v544_v27 = vadd.f32 1e-05, %v512_v62  ;;  %v1234_v4 = vpop.eup %1233  ;;  %v488_v6 = vpop.xlane.xlu1 %487  ;;  %v620_v12 = vmul.f32 %v1232_v43, %v1557_v25 }
 0x165   : > { %v443_v2 = vpop.xlane.xlu0 %442  ;;  %1243 = vrsqrt.f32 %v559_v3  ;;  %v528_v21 = vmul.f32 0.03125, %v488_v6  ;;  %v605_v40 = vmul.f32 %v1234_v4, %v1572_v19 }
 0x166   : > { %v513_v14 = vmul.f32 0.03125, %v443_v2  ;;  %1245 = vrsqrt.f32 %v544_v27  ;;  %1167 = vmatmul.mubr.msk.f32.gmra.mrb[6].mxu1 %vm211_vm0, %v620_v12 }
 0x167   : > { %v1236_v59 = vpop.eup %1235  ;;  %v560_v29 = vadd.f32 1e-05, %v528_v21  ;;  %1145 = vmatprep.mubr.msk.f32.mxu0 %vm211_vm0, %v605_v40 }
 0x168   : > { %v545_v56 = vadd.f32 1e-05, %v513_v14  ;;  %v1238_v18 = vpop.eup %1237  ;;  %v491_v5 = vpop.xlane.xlu1 %490  ;;  %v621_v0 = vmul.f32 %v1236_v59, %v1575_v22 }
 0x169   : > { %v446_v23 = vpop.xlane.xlu0 %445  ;;  %1247 = vrsqrt.f32 %v560_v29  ;;  %v529_v25 = vmul.f32 0.03125, %v491_v5  ;;  %v606_v16 = vmul.f32 %v1238_v18, %v1590_v42 }
 0x16a   : > { %v514_v55 = vmul.f32 0.03125, %v446_v23  ;;  %1249 = vrsqrt.f32 %v545_v56  ;;  %1169 = vmatprep.mubr.msk.f32.mxu1 %vm211_vm0, %v621_v0 }
 0x16b   : > { %v1240_v19 = vpop.eup %1239  ;;  %v561_v30 = vadd.f32 1e-05, %v529_v25  ;;  %1146 = vmatmul.mubr.msk.f32.gmra.mrb[8].mxu0 %vm211_vm0, %v606_v16 }
 0x16c   : > { %v546_v60 = vadd.f32 1e-05, %v514_v55  ;;  %v1242_v61 = vpop.eup %1241  ;;  %v494_v44 = vpop.xlane.xlu1 %493  ;;  %v622_v9 = vmul.f32 %v1240_v19, %v1593_v20 }
 0x16d   : > { %v449_v34 = vpop.xlane.xlu0 %448  ;;  %1251 = vrsqrt.f32 %v561_v30  ;;  %v530_v22 = vmul.f32 0.03125, %v494_v44  ;;  %v607_v32 = vmul.f32 %v1242_v61, %v1602_v37 }
 0x16e   : > { %v515_v35 = vmul.f32 0.03125, %v449_v34  ;;  %1253 = vrsqrt.f32 %v546_v60  ;;  %1170 = vmatmul.mubr.msk.f32.gmra.mrb[8].mxu1 %vm211_vm0, %v622_v9 }
 0x16f   : > { %v1244_v42 = vpop.eup %1243  ;;  %v562_v7 = vadd.f32 1e-05, %v530_v22  ;;  %1148 = vmatprep.mubr.msk.f32.mxu0 %vm211_vm0, %v607_v32 }
 0x170   : > { %v547_v10 = vadd.f32 1e-05, %v515_v35  ;;  %v1246_v33 = vpop.eup %1245  ;;  %v497_v38 = vpop.xlane.xlu1 %496  ;;  %v623_v46 = vmul.f32 %v1244_v42, %v1605_v24 }
 0x171   : > { %v452_v39 = vpop.xlane.xlu0 %451  ;;  %1255 = vrsqrt.f32 %v562_v7  ;;  %v531_v20 = vmul.f32 0.03125, %v497_v38  ;;  %v608_v13 = vmul.f32 %v1246_v33, %v1614_v28 }
 0x172   : > { %v516_v48 = vmul.f32 0.03125, %v452_v39  ;;  %1257 = vrsqrt.f32 %v547_v10  ;;  %1172 = vmatprep.mubr.msk.f32.mxu1 %vm211_vm0, %v623_v46 }
 0x173   : > { %v1248_v37 = vpop.eup %1247  ;;  %v563_v50 = vadd.f32 1e-05, %v531_v20  ;;  %1149 = vmatmul.mubr.msk.f32.gmra.mrb[10].mxu0 %vm211_vm0, %v608_v13 }
 0x174   : > { %v548_v26 = vadd.f32 1e-05, %v516_v48  ;;  %v1250_v1 = vpop.eup %1249  ;;  %v500_v51 = vpop.xlane.xlu1 %499  ;;  %v624_v54 = vmul.f32 %v1248_v37, %v1617_v41 }
 0x175   : > { %1259 = vrsqrt.f32 %v563_v50  ;;  %v532_v11 = vmul.f32 0.03125, %v500_v51  ;;  %v609_v24 = vmul.f32 %v1250_v1, %v1626_v31 }
 0x176   : > { %1261 = vrsqrt.f32 %v548_v26  ;;  %1173 = vmatmul.mubr.msk.f32.gmra.mrb[10].mxu1 %vm211_vm0, %v624_v54 }
 0x177   : > { %v1252_v28 = vpop.eup %1251  ;;  %v564_v8 = vadd.f32 1e-05, %v532_v11  ;;  %1151 = vmatprep.mubr.msk.f32.mxu0 %vm211_vm0, %v609_v24 }
 0x178   : > { %v1254_v58 = vpop.eup %1253  ;;  %v625_v36 = vmul.f32 %v1252_v28, %v1629_v45 }
 0x179   : > { %1263 = vrsqrt.f32 %v564_v8  ;;  %v610_v17 = vmul.f32 %v1254_v58, %v1638_v47 }
 0x17a   : > { %1175 = vmatprep.mubr.msk.f32.mxu1 %vm211_vm0, %v625_v36 }
 0x17b   : > { %v1256_v41 = vpop.eup %1255  ;;  %1152 = vmatmul.mubr.msk.f32.gmra.mrb[12].mxu0 %vm211_vm0, %v610_v17 }
 0x17c   : > { %v1258_v31 = vpop.eup %1257  ;;  %v626_v62 = vmul.f32 %v1256_v41, %v1641_v49  ;;  %v1742_v49 = vld [vmem:[%s1852_s2] ss:$0 sm:$0xff] }
 0x17d   : > { %v611_v52 = vmul.f32 %v1258_v31, %v1650_v63 }
 0x17e   : > { %1176 = vmatmul.mubr.msk.f32.gmra.mrb[12].mxu1 %vm211_vm0, %v626_v62 }
 0x17f   : > { %v1260_v43 = vpop.eup %1259  ;;  %1154 = vmatprep.mubr.msk.f32.mxu0 %vm211_vm0, %v611_v52 }
 0x180   : > { %v1262_v45 = vpop.eup %1261  ;;  %v627_v3 = vmul.f32 %v1260_v43, %v1653_v53 }
 0x181   : > { %v612_v47 = vmul.f32 %v1262_v45, %v1662_v15 }
 0x182   : > { %1178 = vmatprep.mubr.msk.f32.mxu1 %vm211_vm0, %v627_v3 }
 0x183   : > { %v1264_v27 = vpop.eup %1263  ;;  %1155 = vmatmul.mubr.msk.f32.gmra.mrb[14].mxu0 %vm211_vm0, %v612_v47 }
 0x184   : > { %v628_v4 = vmul.f32 %v1264_v27, %v1665_v57 }
 0x186   : > { %1179 = vmatmul.mubr.msk.f32.gmra.mrb[14].mxu1 %vm211_vm0, %v628_v4 }
 0x21e   : > { %v1135_v63 = vpop.f32.mrb[0].mxu0 }
 0x21f   : > { %v803_v53 = vadd.f32 %v1135_v63, %v1742_v49  ;;  %v797_v15 = vpop.f32.mrb[1].mxu0 }
 0x220   : > { %v798_v57 = vadd.f32 %v1742_v49, %v797_v15 }
 0x221   : > { %958 = vst.msk [vmem:[%s1749_s4 + $0x8] sm:$0xff] %vm956_vm1, %v803_v53  ;;  %v1159_v6 = vpop.f32.mrb[0].mxu1 }
 0x222   : > { %957 = vst.msk [vmem:[%s1749_s4] sm:$0xff] %vm956_vm1, %v798_v57  ;;  %v883_v2 = vadd.f32 %v1159_v6, %v1742_v49  ;;  %v877_v12 = vpop.f32.mrb[1].mxu1 }
 0x223   : > { %v878_v21 = vadd.f32 %v1742_v49, %v877_v12 }
 0x224   : > { %974 = vst.msk [vmem:[%s1749_s4 + $0x88] sm:$0xff] %vm956_vm1, %v883_v2 }
 0x225   : > { %973 = vst.msk [vmem:[%s1749_s4 + $0x80] sm:$0xff] %vm956_vm1, %v878_v21 }
 0x226   : > { %v1138_v14 = vpop.f32.mrb[2].mxu0 }
 0x227   : > { %v813_v40 = vadd.f32 %v1138_v14, %v1742_v49  ;;  %v807_v59 = vpop.f32.mrb[3].mxu0 }
 0x228   : > { %v808_v29 = vadd.f32 %v1742_v49, %v807_v59 }
 0x229   : > { %960 = vst.msk [vmem:[%s1749_s4 + $0x18] sm:$0xff] %vm956_vm1, %v813_v40  ;;  %v1162_v56 = vpop.f32.mrb[2].mxu1 }
 0x22a   : > { %959 = vst.msk [vmem:[%s1749_s4 + $0x10] sm:$0xff] %vm956_vm1, %v808_v29  ;;  %v893_v18 = vadd.f32 %v1162_v56, %v1742_v49  ;;  %v887_v5 = vpop.f32.mrb[3].mxu1 }
 0x22b   : > { %v888_v23 = vadd.f32 %v1742_v49, %v887_v5 }
 0x22c   : > { %976 = vst.msk [vmem:[%s1749_s4 + $0x98] sm:$0xff] %vm956_vm1, %v893_v18 }
 0x22d   : > { %975 = vst.msk [vmem:[%s1749_s4 + $0x90] sm:$0xff] %vm956_vm1, %v888_v23 }
 0x22e   : > { %v1141_v0 = vpop.f32.mrb[4].mxu0 }
 0x22f   : > { %v823_v25 = vadd.f32 %v1141_v0, %v1742_v49  ;;  %v817_v55 = vpop.f32.mrb[5].mxu0 }
 0x230   : > { %v818_v16 = vadd.f32 %v1742_v49, %v817_v55 }
 0x231   : > { %962 = vst.msk [vmem:[%s1749_s4 + $0x28] sm:$0xff] %vm956_vm1, %v823_v25  ;;  %v1165_v19 = vpop.f32.mrb[4].mxu1 }
 0x232   : > { %961 = vst.msk [vmem:[%s1749_s4 + $0x20] sm:$0xff] %vm956_vm1, %v818_v16  ;;  %v903_v30 = vadd.f32 %v1165_v19, %v1742_v49  ;;  %v897_v60 = vpop.f32.mrb[5].mxu1 }
 0x233   : > { %v898_v61 = vadd.f32 %v1742_v49, %v897_v60 }
 0x234   : > { %978 = vst.msk [vmem:[%s1749_s4 + $0xa8] sm:$0xff] %vm956_vm1, %v903_v30 }
 0x235   : > { %977 = vst.msk [vmem:[%s1749_s4 + $0xa0] sm:$0xff] %vm956_vm1, %v898_v61 }
 0x236   : > { %v1144_v44 = vpop.f32.mrb[6].mxu0 }
 0x237   : > { %v833_v34 = vadd.f32 %v1144_v44, %v1742_v49  ;;  %v827_v9 = vpop.f32.mrb[7].mxu0 }
 0x238   : > { %v828_v22 = vadd.f32 %v1742_v49, %v827_v9 }
 0x239   : > { %964 = vst.msk [vmem:[%s1749_s4 + $0x38] sm:$0xff] %vm956_vm1, %v833_v34  ;;  %v1168_v35 = vpop.f32.mrb[6].mxu1 }
 0x23a   : > { %963 = vst.msk [vmem:[%s1749_s4 + $0x30] sm:$0xff] %vm956_vm1, %v828_v22  ;;  %v913_v32 = vadd.f32 %v1168_v35, %v1742_v49  ;;  %v907_v42 = vpop.f32.mrb[7].mxu1 }
 0x23b   : > { %v908_v7 = vadd.f32 %v1742_v49, %v907_v42 }
 0x23c   : > { %980 = vst.msk [vmem:[%s1749_s4 + $0xb8] sm:$0xff] %vm956_vm1, %v913_v32 }
 0x23d   : > { %979 = vst.msk [vmem:[%s1749_s4 + $0xb0] sm:$0xff] %vm956_vm1, %v908_v7 }
 0x23e   : > { %v1147_v10 = vpop.f32.mrb[8].mxu0 }
 0x23f   : > { %v843_v33 = vadd.f32 %v1147_v10, %v1742_v49  ;;  %v837_v38 = vpop.f32.mrb[9].mxu0 }
 0x240   : > { %v838_v39 = vadd.f32 %v1742_v49, %v837_v38 }
 0x241   : > { %966 = vst.msk [vmem:[%s1749_s4 + $0x48] sm:$0xff] %vm956_vm1, %v843_v33  ;;  %v1171_v46 = vpop.f32.mrb[8].mxu1 }
 0x242   : > { %965 = vst.msk [vmem:[%s1749_s4 + $0x40] sm:$0xff] %vm956_vm1, %v838_v39  ;;  %v923_v20 = vadd.f32 %v1171_v46, %v1742_v49  ;;  %v917_v48 = vpop.f32.mrb[9].mxu1 }
 0x243   : > { %v918_v13 = vadd.f32 %v1742_v49, %v917_v48 }
 0x244   : > { %982 = vst.msk [vmem:[%s1749_s4 + $0xc8] sm:$0xff] %vm956_vm1, %v923_v20 }
 0x245   : > { %981 = vst.msk [vmem:[%s1749_s4 + $0xc0] sm:$0xff] %vm956_vm1, %v918_v13 }
 0x246   : > { %v1150_v37 = vpop.f32.mrb[10].mxu0 }
 0x247   : > { %v853_v50 = vadd.f32 %v1150_v37, %v1742_v49  ;;  %v847_v26 = vpop.f32.mrb[11].mxu0 }
 0x248   : > { %v848_v1 = vadd.f32 %v1742_v49, %v847_v26 }
 0x249   : > { %968 = vst.msk [vmem:[%s1749_s4 + $0x58] sm:$0xff] %vm956_vm1, %v853_v50  ;;  %v1174_v51 = vpop.f32.mrb[10].mxu1 }
 0x24a   : > { %967 = vst.msk [vmem:[%s1749_s4 + $0x50] sm:$0xff] %vm956_vm1, %v848_v1  ;;  %v933_v54 = vadd.f32 %v1174_v51, %v1742_v49  ;;  %v927_v11 = vpop.f32.mrb[11].mxu1 }
 0x24b   : > { %v928_v24 = vadd.f32 %v1742_v49, %v927_v11 }
 0x24c   : > { %984 = vst.msk [vmem:[%s1749_s4 + $0xd8] sm:$0xff] %vm956_vm1, %v933_v54 }
 0x24d   : > { %983 = vst.msk [vmem:[%s1749_s4 + $0xd0] sm:$0xff] %vm956_vm1, %v928_v24 }
 0x24e   : > { %v1153_v28 = vpop.f32.mrb[12].mxu0 }
 0x24f   : > { %v863_v8 = vadd.f32 %v1153_v28, %v1742_v49  ;;  %v857_v58 = vpop.f32.mrb[13].mxu0 }
 0x250   : > { %v858_v36 = vadd.f32 %v1742_v49, %v857_v58 }
 0x251   : > { %970 = vst.msk [vmem:[%s1749_s4 + $0x68] sm:$0xff] %vm956_vm1, %v863_v8  ;;  %v1177_v17 = vpop.f32.mrb[12].mxu1 }
 0x252   : > { %969 = vst.msk [vmem:[%s1749_s4 + $0x60] sm:$0xff] %vm956_vm1, %v858_v36  ;;  %v943_v41 = vadd.f32 %v1177_v17, %v1742_v49  ;;  %v937_v31 = vpop.f32.mrb[13].mxu1 }
 0x253   : > { %v938_v62 = vadd.f32 %v1742_v49, %v937_v31 }
 0x254   : > { %986 = vst.msk [vmem:[%s1749_s4 + $0xe8] sm:$0xff] %vm956_vm1, %v943_v41 }
 0x255   : > { %985 = vst.msk [vmem:[%s1749_s4 + $0xe0] sm:$0xff] %vm956_vm1, %v938_v62 }
 0x256   : > { %v1156_v52 = vpop.f32.mrb[14].mxu0 }
 0x257   : > { %v873_v43 = vadd.f32 %v1156_v52, %v1742_v49  ;;  %v867_v45 = vpop.f32.mrb[15].mxu0 }
 0x258   : > { %v868_v3 = vadd.f32 %v1742_v49, %v867_v45 }
 0x259   : > { %972 = vst.msk [vmem:[%s1749_s4 + $0x78] sm:$0xff] %vm956_vm1, %v873_v43  ;;  %v1180_v47 = vpop.f32.mrb[14].mxu1 }
 0x25a   : > { %971 = vst.msk [vmem:[%s1749_s4 + $0x70] sm:$0xff] %vm956_vm1, %v868_v3  ;;  %v953_v27 = vadd.f32 %v1180_v47, %v1742_v49  ;;  %v947_v4 = vpop.f32.mrb[15].mxu1 }
 0x25b   : > { %v948_v63 = vadd.f32 %v1742_v49, %v947_v4 }
 0x25c   : > { %988 = vst.msk [vmem:[%s1749_s4 + $0xf8] sm:$0xff] %vm956_vm1, %v953_v27 }
 0x25d   : > { %987 = vst.msk [vmem:[%s1749_s4 + $0xf0] sm:$0xff] %vm956_vm1, %v948_v63 }
 0x25e PF: > { %s13_s12 = sadd.s32 1, %s1271_s12  }
 0x25f   : > { %p10_p4 = scmp.ge.s32.totalorder %s13_s12, 4  }
 0x261   :  { %12 = sbr.rel (!%p10_p4) target bundleno = 1 (0x1), region = 62 }

</bundles_post_ra>
